<compile_context>
chip_gen: v6e
topology: v6e:2x2x1
jax: 0.10.0
libtpu: 0.0.40
codegen_flags: <defaults>
</compile_context>

<pallas_src>
import jax
import jax.numpy as jnp
from jax.experimental import pallas as pl
from jax.experimental.pallas import tpu as pltpu


ROW_TILE = 512  # batch tile used when B is large and divisible by it


# ----------------------------- Pallas kernel ------------------------------- #

def goal_discriminator_kernel(x_ref, w1_ref, b1_ref, w2_ref, b2_ref,
                              out_ref, query_ref):
    """Fused Linear(256,256)+ReLU -> Linear(256,4).

    x_ref     : (Bt, 256)  input features (f32; cast to bf16 for the MXU)
    w1_ref    : (256, 256) linear1 weight, pre-transposed (in, out), bf16
    b1_ref    : (1, 256)   linear1 bias, f32
    w2_ref    : (256, 4)   linear2 weight, pre-transposed (in, out), bf16
    b2_ref    : (1, 4)     linear2 bias, f32
    out_ref   : (Bt, 4)    linear2 output  (PyTorch `x`), f32
    query_ref : (Bt, 256)  relu(linear1)   (PyTorch `query`), f32
    """
    x_bf = x_ref[...].astype(jnp.bfloat16)
    # bf16 x bf16 -> f32 accumulate on the MXU
    q = jnp.dot(x_bf, w1_ref[...], preferred_element_type=jnp.float32)
    # bias add + ReLU in f32 on the VPU
    q = jnp.maximum(q + b1_ref[...], 0.0)
    query_ref[...] = q
    y = jnp.dot(q.astype(jnp.bfloat16), w2_ref[...],
                preferred_element_type=jnp.float32)
    out_ref[...] = y + b2_ref[...]


# ------------------------------ wrapper ------------------------------------ #

def _full_spec(shape):
    # Gridless call: the whole array is one VMEM block.
    return pl.BlockSpec(shape, lambda: (0,) * len(shape))


def _cost_estimate(B, D, H, O):
    flops = 2 * B * D * H + 2 * B * H * O
    bytes_accessed = (
        B * D * 4            # x (f32 in HBM)
        + D * H * 2          # w1 (bf16)
        + H * 4              # b1 (f32)
        + H * O * 2          # w2 (bf16)
        + O * 4              # b2 (f32)
        + B * O * 4          # out
        + B * H * 4          # query
    )
    return pl.CostEstimate(flops=flops, transcendentals=0,
                           bytes_accessed=bytes_accessed)


@jax.jit
def goal_discriminator(img_feat, params):
    B, D = img_feat.shape
    w1, b1, w2, b2 = params["w1"], params["b1"], params["w2"], params["b2"]
    H = w1.shape[1]   # 256
    O = w2.shape[1]   # 4

    out_shape = (
        jax.ShapeDtypeStruct((B, O), jnp.float32),
        jax.ShapeDtypeStruct((B, H), jnp.float32),
    )
    cost = _cost_estimate(B, D, H, O)

    if B > ROW_TILE and B % ROW_TILE == 0:
        # Large batch: 1-D grid over rows. Weights/biases use a constant
        # index_map so they stay VMEM-resident across the whole grid; x,
        # query, out are pipelined (double-buffered) per row tile.
        grid = (B // ROW_TILE,)
        call = pl.pallas_call(
            goal_discriminator_kernel,
            out_shape=out_shape,
            grid=grid,
            in_specs=[
                pl.BlockSpec((ROW_TILE, D), lambda i: (i, 0)),
                pl.BlockSpec((D, H), lambda i: (0, 0)),
                pl.BlockSpec((1, H), lambda i: (0, 0)),
                pl.BlockSpec((H, O), lambda i: (0, 0)),
                pl.BlockSpec((1, O), lambda i: (0, 0)),
            ],
            out_specs=(
                pl.BlockSpec((ROW_TILE, O), lambda i: (i, 0)),
                pl.BlockSpec((ROW_TILE, H), lambda i: (i, 0)),
            ),
            compiler_params=pltpu.CompilerParams(
                dimension_semantics=("parallel",)),  # uses both TCs on v7x
            cost_estimate=cost,
        )
    else:
        # Small batch: single fused gridless call (launch/weight-DMA bound;
        # per-step grid overhead would dominate these tiny matmuls).
        call = pl.pallas_call(
            goal_discriminator_kernel,
            out_shape=out_shape,
            in_specs=[
                _full_spec((B, D)),
                _full_spec((D, H)),
                _full_spec((1, H)),
                _full_spec((H, O)),
                _full_spec((1, O)),
            ],
            out_specs=(
                _full_spec((B, O)),
                _full_spec((B, H)),
            ),
            cost_estimate=cost,
        )

    return call(img_feat, w1, b1, w2, b2)


# ------------------------------ params ------------------------------------- #

def init_params(key):
    """Deterministic synthetic parameters.

    Weights are stored pre-transposed ((in, out)) and cast to bfloat16 ONCE
    here, so the kernel performs x @ W directly on the bf16-native MXU with no
    per-forward transposes or casts of the weights.  Biases stay f32 (VPU).
    """
    k1, k2, k3, k4 = jax.random.split(key, 4)
    w1 = (jax.random.normal(k1, (256, 256), jnp.float32)
          / jnp.sqrt(256.0)).astype(jnp.bfloat16)
    b1 = 0.01 * jax.random.normal(k2, (1, 256), jnp.float32)
    w2 = (jax.random.normal(k3, (256, 4), jnp.float32)
          / jnp.sqrt(256.0)).astype(jnp.bfloat16)
    b2 = 0.01 * jax.random.normal(k4, (1, 4), jnp.float32)
    return {"w1": w1, "b1": b1, "w2": w2, "b2": b2}


# ------------------------------ reference ----------------------------------- #

def reference_forward(img_feat, params):
    """Pure-JAX reference using the same bf16-matmul / f32-accumulate recipe."""
    x_bf = img_feat.astype(jnp.bfloat16)
    q = jnp.dot(x_bf, params["w1"], preferred_element_type=jnp.float32)
    q = jnp.maximum(q + params["b1"], 0.0)
    y = jnp.dot(q.astype(jnp.bfloat16), params["w2"],
                preferred_element_type=jnp.float32) + params["b2"]
    return y, q


# --------------------------------- main ------------------------------------ #

if __name__ == "__main__":
    key = jax.random.PRNGKey(0)
    k_in, k_par, k_big = jax.random.split(key, 3)
    params = init_params(k_par)

    # --- small batch: gridless fused path --------------------------------- #
    B = 2
    img_feat = jax.random.normal(k_in, (B, 256), jnp.float32)
    out, query = goal_discriminator(img_feat, params)
    out, query = jax.block_until_ready((out, query))

    x_ref, q_ref = reference_forward(img_feat, params)
    assert out.shape == (B, 4), out.shape
    assert query.shape == (B, 256), query.shape
    assert bool(jnp.all(query >= 0.0)), "ReLU output must be non-negative"
    assert bool(jnp.allclose(query, q_ref, atol=2e-2, rtol=2e-2))
    assert bool(jnp.allclose(out, x_ref, atol=2e-2, rtol=2e-2))

    # --- large batch: 1-D grid over rows (weights VMEM-resident) ---------- #
    BL = 1024
    img_feat_big = jax.random.normal(k_big, (BL, 256), jnp.float32)
    out_b, query_b = goal_discriminator(img_feat_big, params)
    out_b, query_b = jax.block_until_ready((out_b, query_b))

    x_ref_b, q_ref_b = reference_forward(img_feat_big, params)
    assert out_b.shape == (BL, 4), out_b.shape
    assert query_b.shape == (BL, 256), query_b.shape
    assert bool(jnp.allclose(query_b, q_ref_b, atol=2e-2, rtol=2e-2))
    assert bool(jnp.allclose(out_b, x_ref_b, atol=2e-2, rtol=2e-2))

    print("KERNEL_OK")
</pallas_src>

<mosaic_0001>
module attributes {stable_mosaic.version = 11 : i64} {
  func.func @goal_discriminator_kernel(%arg0: memref<2x256xf32, #tpu.memory_space<vmem>>, %arg1: memref<256x256xbf16, #tpu.memory_space<vmem>>, %arg2: memref<1x256xf32, #tpu.memory_space<vmem>>, %arg3: memref<256x4xbf16, #tpu.memory_space<vmem>>, %arg4: memref<1x4xf32, #tpu.memory_space<vmem>>, %arg5: memref<2x4xf32, #tpu.memory_space<vmem>>, %arg6: memref<2x256xf32, #tpu.memory_space<vmem>>) attributes {dimension_semantics = [], scalar_prefetch = 0 : i64, scratch_operands = 0 : i64, tpu.core_type = #tpu.core_type<tc>} {
    %c0 = arith.constant 0 : index
    %c0_0 = arith.constant 0 : index
    %0 = vector.load %arg0[%c0, %c0_0] : memref<2x256xf32, #tpu.memory_space<vmem>>, vector<2x256xf32>
    %1 = arith.truncf %0 : vector<2x256xf32> to vector<2x256xbf16>
    %c0_1 = arith.constant 0 : index
    %c0_2 = arith.constant 0 : index
    %2 = vector.load %arg1[%c0_1, %c0_2] : memref<256x256xbf16, #tpu.memory_space<vmem>>, vector<256x256xbf16>
    %cst = arith.constant dense<0.000000e+00> : vector<2x256xf32>
    %3 = tpu.matmul %1, %2, %cst {dimension_numbers = #tpu.dot_dimension_numbers<[1], [0], [0], [1], [0, 0, 1, 1], [], []>} : vector<2x256xbf16>, vector<256x256xbf16>, vector<2x256xf32> -> vector<2x256xf32>
    %c0_3 = arith.constant 0 : index
    %c0_4 = arith.constant 0 : index
    %4 = vector.load %arg2[%c0_3, %c0_4] : memref<1x256xf32, #tpu.memory_space<vmem>>, vector<1x256xf32>
    %5 = vector.broadcast %4 : vector<1x256xf32> to vector<2x256xf32>
    %6 = arith.addf %3, %5 : vector<2x256xf32>
    %cst_5 = arith.constant 0.000000e+00 : f32
    %7 = vector.broadcast %cst_5 : f32 to vector<2x256xf32>
    %8 = arith.maximumf %6, %7 : vector<2x256xf32>
    %c0_6 = arith.constant 0 : index
    %c0_7 = arith.constant 0 : index
    %9 = vector.load %arg6[%c0_6, %c0_7] : memref<2x256xf32, #tpu.memory_space<vmem>>, vector<2x256xf32>
    tpu.vector_store %arg6[%c0_6, %c0_7], %8 {strides = array<i32>} : memref<2x256xf32, #tpu.memory_space<vmem>>, vector<2x256xf32>,
    %10 = arith.truncf %8 : vector<2x256xf32> to vector<2x256xbf16>
    %c0_8 = arith.constant 0 : index
    %c0_9 = arith.constant 0 : index
    %11 = vector.load %arg3[%c0_8, %c0_9] : memref<256x4xbf16, #tpu.memory_space<vmem>>, vector<256x4xbf16>
    %cst_10 = arith.constant dense<0.000000e+00> : vector<2x4xf32>
    %12 = tpu.matmul %10, %11, %cst_10 {dimension_numbers = #tpu.dot_dimension_numbers<[1], [0], [0], [1], [0, 0, 1, 1], [], []>} : vector<2x256xbf16>, vector<256x4xbf16>, vector<2x4xf32> -> vector<2x4xf32>
    %c0_11 = arith.constant 0 : index
    %c0_12 = arith.constant 0 : index
    %13 = vector.load %arg4[%c0_11, %c0_12] : memref<1x4xf32, #tpu.memory_space<vmem>>, vector<1x4xf32>
    %14 = vector.broadcast %13 : vector<1x4xf32> to vector<2x4xf32>
    %15 = arith.addf %12, %14 : vector<2x4xf32>
    %c0_13 = arith.constant 0 : index
    %c0_14 = arith.constant 0 : index
    %16 = vector.load %arg5[%c0_13, %c0_14] : memref<2x4xf32, #tpu.memory_space<vmem>>, vector<2x4xf32>
    tpu.vector_store %arg5[%c0_13, %c0_14], %15 {strides = array<i32>} : memref<2x4xf32, #tpu.memory_space<vmem>>, vector<2x4xf32>,
    return
  }
}

</mosaic_0001>

<bundles_post_ra>
// kernel: goal_discriminator.1
= control target key start
LH: loop header
LB: loop body
LE: loop exit
PB: predicated region body
PF: predicated region fallthrough
CT: control target
= control target key end

     0   :  { %12 = vsyncpa [#allocation3], 0  ;;  %s840_s0 = inlined_call_operand.vmem [shape: f32[2,256], index: 0, kind: input, shape index: {}]   ;;  %s841_s1 = inlined_call_operand.hbm [shape: bf16[256,256], index: 1, kind: input, shape index: {}]   ;;  %s842_s2 = inlined_call_operand.vmem [shape: f32[1,256], index: 2, kind: input, shape index: {}]   ;;  %s843_s3 = inlined_call_operand.vmem [shape: bf16[256,4], index: 3, kind: input, shape index: {}]   ;;  %s844_s4 = inlined_call_operand.vmem [shape: f32[1,4], index: 4, kind: input, shape index: {}]   ;;  %s845_s5 = inlined_call_operand.hbm [shape: f32[2,4], index: 5, kind: output, shape index: {0}]   ;;  %s846_s6 = inlined_call_operand.hbm [shape: f32[2,256], index: 6, kind: output, shape index: {1}]  }
   0x1   :  { %13 = vsyncpa [#allocation4], 0 }
   0x2   :  { %14 = vsyncpa [#allocation7], 0  ;;  %s728_s21 = smov [#allocation2]  }
   0x3   :  { %s22_s22 = sshll.u32 %s728_s21, 4  ;;  %s23_s22 = int_to_ptr.vmem [resolvable:$true] %s22_s22 }
   0x4   :  { %s670_s23 = scalar_lea.vmem %s23_s22, 4096  ;;  %p675_p1 = scmp.lt.s32.totalorder %s23_s22, %s23_s22 }
   0x5   :  { %p671_p0 = scmp.ne.s32.totalorder %s23_s22, %s670_s23  ;;  %p676_p2 = scmp.lt.s32.totalorder %s670_s23, %s670_s23 }
   0x7   :  { %p677_p3 = por %p676_p2, %p675_p1 }
   0x9   :  { %p678_p4 = pnand %p677_p3, %p671_p0 }
   0xb   :  { %681 = shalt.err (!%p678_p4)
}
   0xc   :  { %s729_s24 = smov 128   ;;  %s730_s25 = smov 8  }
   0xd   :  { %28 = dma.hbm_to_vmem [thread:$0]  %s841_s1, 4096, %s23_s22, [#allocation3], %s729_s24, %s729_s24, %s730_s25  }
   0xe   :  { %722 = dma.done.wait [#allocation3], 4096  }
   0xf   :  { %723 = vsyncadd [#allocation3], 4294963200  ;;  %v598_v0 = vld [vmem:[#allocation2 + $0x74] ss:$8 sps:$4 sm:$0xff]   ;;  %v600_v1 = vld [vmem:[#allocation2 + $0x70] ss:$8 sps:$4 sm:$0xff]   ;;  %v87_v52 = vlaneseq }
  0x10   :  { %257 = vmatprep.subr.bf16.mxu0 %v598_v0  ;;  %v601_v2 = vld [vmem:[#allocation2 + $0x64] ss:$8 sps:$4 sm:$0xff]   ;;  %v603_v3 = vld [vmem:[#allocation2 + $0x60] ss:$8 sps:$4 sm:$0xff]   ;;  %v604_v4 = vld [vmem:[#allocation2 + $0x54] ss:$8 sps:$4 sm:$0xff]  }
  0x11   :  { %258 = vmatpush1.bf16.msra.mxu0 %v600_v1  ;;  %v606_v5 = vld [vmem:[#allocation2 + $0x50] ss:$8 sps:$4 sm:$0xff]   ;;  %v607_v6 = vld [vmem:[#allocation2 + $0x44] ss:$8 sps:$4 sm:$0xff]   ;;  %v609_v7 = vld [vmem:[#allocation2 + $0x40] ss:$8 sps:$4 sm:$0xff]  }
  0x12   :  { %259 = vmatprep.subr.bf16.mxu0 %v601_v2  ;;  %v610_v8 = vld [vmem:[#allocation2 + $0x34] ss:$8 sps:$4 sm:$0xff]   ;;  %v612_v9 = vld [vmem:[#allocation2 + $0x30] ss:$8 sps:$4 sm:$0xff]   ;;  %v613_v10 = vld [vmem:[#allocation2 + $0x24] ss:$8 sps:$4 sm:$0xff]  }
  0x13   :  { %v615_v11 = vld [vmem:[#allocation2 + $0x20] ss:$8 sps:$4 sm:$0xff]   ;;  %v616_v12 = vld [vmem:[#allocation2 + $0x14] ss:$8 sps:$4 sm:$0xff]   ;;  %v618_v13 = vld [vmem:[#allocation2 + $0x10] ss:$8 sps:$4 sm:$0xff]  }
  0x14   :  { %v774_v14 = vld.sshfl [vmem:[%s840_s0] sm:$0x33 pattern:$0x76325410]  ;;  %v619_v15 = vld [vmem:[#allocation2 + $0x4] ss:$8 sps:$4 sm:$0xff]  }
  0x15   :  { %260 = vmatpush1.bf16.msra.mxu0 %v603_v3  ;;  %v48_v16 = vcombine.high %v774_v14, %v774_v14  ;;  %v646_v17 = vld [vmem:[%s843_s3 + $0x78] sm:$0xff]   ;;  %v648_v20 = vld [vmem:[%s843_s3 + $0x70] sm:$0xff]   ;;  %v650_v22 = vld [vmem:[%s843_s3 + $0x68] sm:$0xff]   ;;  %v51_v47 = vpack.c.bf16 %v774_v14, %v774_v14  ;;  %v88_v53 = vshrl.u32 %v87_v52, 7 }
  0x16   :  { %261 = vmatprep.subr.bf16.mxu0 %v604_v4  ;;  %v647_v18 = vld [vmem:[%s843_s3 + $0x38] sm:$0xff]   ;;  %571 = vmatprep.subr.bf16.mxu1 %v646_v17  ;;  %v649_v21 = vld [vmem:[%s843_s3 + $0x30] sm:$0xff]   ;;  %v621_v23 = vld [vmem:[#allocation2] ss:$8 sps:$4 sm:$0xff]  }
  0x17   :  { %v52_v19 = vpack.c.bf16 %v48_v16, %v48_v16  ;;  %572 = vmatpush3.bf16.msra.mxu1 %v647_v18  ;;  %v622_v24 = vld [vmem:[#allocation2 + $0xf4] ss:$8 sps:$4 sm:$0xff]   ;;  %v651_v25 = vld [vmem:[%s843_s3 + $0x28] sm:$0xff]   ;;  %v652_v26 = vld [vmem:[%s843_s3 + $0x60] sm:$0xff]   ;;  %v89_v54 = vsub.s32 0, %v88_v53  ;;  %v93_v56 = vsub.s32 1, %v88_v53 }
  0x18   :  { %573 = vmatprep.subr.bf16.mxu1 %v648_v20  ;;  %v624_v27 = vld [vmem:[#allocation2 + $0xf0] ss:$8 sps:$4 sm:$0xff]   ;;  %v625_v28 = vld [vmem:[#allocation2 + $0xe4] ss:$8 sps:$4 sm:$0xff]   ;;  %v627_v29 = vld [vmem:[#allocation2 + $0xe0] ss:$8 sps:$4 sm:$0xff]  }
  0x19   :  { %262 = vmatpush1.bf16.msra.mxu0 %v606_v5  ;;  %289 = vmatprep.mubr.bf16.mxu0 %v52_v19  ;;  %v653_v30 = vld [vmem:[%s843_s3 + $0x20] sm:$0xff]   ;;  %v628_v31 = vld [vmem:[#allocation2 + $0xd4] ss:$8 sps:$4 sm:$0xff]   ;;  %v630_v35 = vld [vmem:[#allocation2 + $0xd0] ss:$8 sps:$4 sm:$0xff]  }
  0x1a   :  { %263 = vmatprep.subr.bf16.mxu0 %v607_v6  ;;  %v654_v32 = vld [vmem:[%s843_s3 + $0x58] sm:$0xff]   ;;  %v656_v34 = vld [vmem:[%s843_s3 + $0x50] sm:$0xff]   ;;  %v631_v36 = vld [vmem:[#allocation2 + $0xc4] ss:$8 sps:$4 sm:$0xff]  }
  0x1b   :  { %574 = vmatpush3.bf16.msra.mxu1 %v649_v21  ;;  %v655_v33 = vld [vmem:[%s843_s3 + $0x18] sm:$0xff]   ;;  %v657_v37 = vld [vmem:[%s843_s3 + $0x10] sm:$0xff]   ;;  %v633_v38 = vld [vmem:[#allocation2 + $0xc0] ss:$8 sps:$4 sm:$0xff]  }
  0x1c   :  { %575 = vmatprep.subr.bf16.mxu1 %v650_v22  ;;  %v634_v39 = vld [vmem:[#allocation2 + $0xb4] ss:$8 sps:$4 sm:$0xff]   ;;  %v636_v40 = vld [vmem:[#allocation2 + $0xb0] ss:$8 sps:$4 sm:$0xff]   ;;  %v637_v41 = vld [vmem:[#allocation2 + $0xa4] ss:$8 sps:$4 sm:$0xff]  }
  0x1d   :  { %264 = vmatpush1.bf16.msra.mxu0 %v609_v7  ;;  %v639_v42 = vld [vmem:[#allocation2 + $0xa0] ss:$8 sps:$4 sm:$0xff]   ;;  %v640_v43 = vld [vmem:[#allocation2 + $0x94] ss:$8 sps:$4 sm:$0xff]   ;;  %v642_v44 = vld [vmem:[#allocation2 + $0x90] ss:$8 sps:$4 sm:$0xff]  }
  0x1e   :  { %265 = vmatprep.subr.bf16.mxu0 %v610_v8  ;;  %v643_v45 = vld [vmem:[#allocation2 + $0x84] ss:$8 sps:$4 sm:$0xff]   ;;  %v645_v46 = vld [vmem:[#allocation2 + $0x80] ss:$8 sps:$4 sm:$0xff]  }
  0x1f   :  { %576 = vmatpush3.bf16.msra.mxu1 %v651_v25  ;;  %v658_v48 = vld [vmem:[%s843_s3 + $0x48] sm:$0xff]   ;;  %v660_v50 = vld [vmem:[%s843_s3 + $0x40] sm:$0xff]  }
  0x20   :  { %577 = vmatprep.subr.bf16.mxu1 %v652_v26  ;;  %v659_v49 = vld [vmem:[%s843_s3 + $0x8] sm:$0xff]   ;;  %v661_v51 = vld [vmem:[%s843_s3] sm:$0xff]   ;;  %s731_s3 = smov [#allocation6]  }
  0x21   :  { %266 = vmatpush1.bf16.msra.mxu0 %v612_v9  ;;  %v85_v55 = vld [vmem:[%s842_s2] sm:$0x3]  ;;  %s507_s12 = sshll.u32 %s731_s3, 4  ;;  %s508_s12 = int_to_ptr.vmem [resolvable:$true] %s507_s12 }
  0x22   :  { %267 = vmatprep.subr.bf16.mxu0 %v613_v10  ;;  %v90_v57 = vrot.slane %v85_v55, %v89_v54  ;;  %v94_v58 = vrot.slane %v85_v55, %v93_v56  ;;  %s682_s2 = scalar_lea.vmem %s508_s12, 64  ;;  %p687_p6 = scmp.lt.s32.totalorder %s508_s12, %s508_s12 }
  0x23   :  { %578 = vmatpush3.bf16.msra.mxu1 %v653_v30  ;;  %p683_p5 = scmp.ne.s32.totalorder %s508_s12, %s682_s2  ;;  %p688_p7 = scmp.lt.s32.totalorder %s682_s2, %s682_s2 }
  0x24   :  { %579 = vmatprep.subr.bf16.mxu1 %v654_v32 }
  0x25   :  { %268 = vmatpush1.bf16.msra.mxu0 %v615_v11  ;;  %p689_p8 = por %p688_p7, %p687_p6 }
  0x26   :  { %269 = vmatprep.subr.bf16.mxu0 %v616_v12 }
  0x27   :  { %580 = vmatpush3.bf16.msra.mxu1 %v655_v33  ;;  %p690_p9 = pnand %p689_p8, %p683_p5 }
  0x28   :  { %581 = vmatprep.subr.bf16.mxu1 %v656_v34 }
  0x29   :  { %270 = vmatpush1.bf16.msra.mxu0 %v618_v13 }
  0x2a   :  { %271 = vmatprep.subr.bf16.mxu0 %v619_v15 }
  0x2b   :  { %582 = vmatpush3.bf16.msra.mxu1 %v657_v37 }
  0x2c   :  { %583 = vmatprep.subr.bf16.mxu1 %v658_v48 }
  0x2d   :  { %272 = vmatpush1.bf16.msra.mxu0 %v621_v23 }
  0x2e   :  { %273 = vmatprep.subr.bf16.mxu0 %v622_v24 }
  0x2f   :  { %584 = vmatpush3.bf16.msra.mxu1 %v659_v49 }
  0x30   :  { %585 = vmatprep.subr.bf16.mxu1 %v660_v50 }
  0x31   :  { %274 = vmatpush2.bf16.msra.mxu0 %v624_v27 }
  0x32   :  { %275 = vmatprep.subr.bf16.mxu0 %v625_v28 }
  0x33   :  { %586 = vmatpush3.bf16.msra.mxu1 %v661_v51 }
  0x35   :  { %276 = vmatpush2.bf16.msra.mxu0 %v627_v29 }
  0x36   :  { %277 = vmatprep.subr.bf16.mxu0 %v628_v31 }
  0x39   :  { %278 = vmatpush2.bf16.msra.mxu0 %v630_v35 }
  0x3a   :  { %279 = vmatprep.subr.bf16.mxu0 %v631_v36 }
  0x3d   :  { %280 = vmatpush2.bf16.msra.mxu0 %v633_v38 }
  0x3e   :  { %281 = vmatprep.subr.bf16.mxu0 %v634_v39 }
  0x41   :  { %282 = vmatpush2.bf16.msra.mxu0 %v636_v40 }
  0x42   :  { %283 = vmatprep.subr.bf16.mxu0 %v637_v41 }
  0x45   :  { %284 = vmatpush2.bf16.msra.mxu0 %v639_v42 }
  0x46   :  { %285 = vmatprep.subr.bf16.mxu0 %v640_v43 }
  0x49   :  { %286 = vmatpush2.bf16.msra.mxu0 %v642_v44 }
  0x4a   :  { %287 = vmatprep.subr.bf16.mxu0 %v643_v45 }
  0x4d   :  { %288 = vmatpush2.bf16.msra.mxu0 %v645_v46 }
  0x50   :  { %290 = vmatmul.mubr.bf16.vlgmr.msra.gmra.mxu0 %v51_v47 }
 0x110   :  { %v291_v59 = vpop.f32.mrf.mxu0 }
 0x111   :  { %v292_v60 = vadd.f32 %v291_v59, %v90_v57 }
 0x112   :  { %v293_v61 = vpop.f32.mrf.mxu0 }
 0x113   :  { %v294_v62 = vadd.f32 %v293_v61, %v94_v58  ;;  %v298_v63 = vmax.f32 %v292_v60, 0.0 }
 0x114   :  { %v295_v0 = vpop.f32.mrf.mxu0 }
 0x115   :  { %v299_v1 = vmax.f32 %v294_v62, 0.0  ;;  %v312_v5 = vpack.c.bf16 %v298_v63, %v298_v63 }
 0x116   :  { %v296_v2 = vpop.f32.mrf.mxu0 }
 0x117   :  { %v302_v3 = vcombine.low %v298_v63, %v299_v1  ;;  %v313_v4 = vpack.c.bf16 %v299_v1, %v299_v1 }
 0x119   :  { %553 = vst.sshfl [vmem:[#allocation6] sm:$0x33 pattern:$0x76325410] %v302_v3  ;;  %481 = vmatprep.mubr.bf16.mxu1 %v313_v4 }
 0x11a   :  { %482 = vmatmul.mubr.bf16.vlgmr.msra.gmra.mxu1 %v312_v5 }
 0x11b   :  { %693 = shalt.err (!%p690_p9)
}
 0x11c   :  { %510 = dma.vmem_to_hbm [thread:$0]  %s508_s12, 64, %s846_s6, [#allocation7]   ;;  %v554_v7 = vld [vmem:[%s844_s4] ss:$0 sm:$0xff]  ;;  %vm489_vm0 = vcmask 25600  }
 0x11d   :  { %s732_s17 = smov [#allocation5]  }
 0x11e   :  { %s497_s18 = sshll.u32 %s732_s17, 4  ;;  %s498_s18 = int_to_ptr.vmem [resolvable:$true] %s497_s18 }
 0x11f   :  { %s702_s19 = scalar_lea.vmem %s498_s18, 32  ;;  %p707_p11 = scmp.lt.s32.totalorder %s498_s18, %s498_s18 }
 0x120   :  { %p703_p10 = scmp.ne.s32.totalorder %s498_s18, %s702_s19  ;;  %p708_p12 = scmp.lt.s32.totalorder %s702_s19, %s702_s19 }
 0x122   :  { %p709_p13 = por %p708_p12, %p707_p11 }
 0x124   :  { %p710_p0 = pnand %p709_p13, %p703_p10 }
 0x1da   :  { %v587_v6 = vpop.f32.mrf.mxu1 }
 0x1dc   :  { %v588_v8 = vpop.f32.mrf.mxu1 }
 0x1dd   :  { %v589_v9 = vadd.f32 %v588_v8, %v587_v6 }
 0x1de   :  { %v590_v10 = vpop.f32.mrf.mxu1 }
 0x1df   :  { %v484_v11 = vadd.f32 %v589_v9, %v554_v7 }
 0x1e0   :  { %v591_v12 = vpop.f32.mrf.mxu1 }
 0x1e1   :  { %490 = vst.msk [vmem:[#allocation5] sm:$0x3] %vm489_vm0, %v484_v11 }
 0x1e2   :  { %713 = shalt.err (!%p710_p0)
}
 0x1e3   :  { %500 = dma.vmem_to_hbm [thread:$0]  %s498_s18, 32, %s845_s5, [#allocation4]  }
 0x1e4   :  { %724 = dma.done.wait [#allocation4], 32  }
 0x1e5   :  { %725 = vsyncadd [#allocation4], 4294967264 }
 0x1e6   :  { %726 = dma.done.wait [#allocation7], 64  }
 0x1e7   :  { %727 = vsyncadd [#allocation7], 4294967232 }
 0x1e8   :  { %517 = vsyncpa [#allocation3], 1 }
 0x1e9   :  { %518 = vsyncpa [#allocation4], 1 }
 0x1ea   :  { %519 = vsyncpa [#allocation7], 1 }

</bundles_post_ra>
